<compile_context>
chip_gen: v6e
topology: v6e:2x2x1
jax: 0.10.0
libtpu: 0.0.40
codegen_flags: <defaults>
</compile_context>

<pallas_src>
import jax
import jax.numpy as jnp
from jax.experimental import pallas as pl
from jax.experimental.pallas import tpu as pltpu


def _round_up(a, b):
    return (a + b - 1) // b * b


def _vmem_budget_bytes():
    """~3/4 of physical VMEM: ~48 MiB on v7x, ~96 MiB on v5e/v6e."""
    cap = 64 << 20
    try:
        info = pltpu.get_tpu_info()
        cap = int(getattr(info, "vmem_capacity_bytes", cap)) or cap
    except Exception:
        pass
    return int(min(cap * 3 // 4, 112 << 20))


# -----------------------------------------------------------------------------
# Kernel 1 (fused path): whole vocab resident per row tile (small / moderate V).
# -----------------------------------------------------------------------------
def _fused_kernel(x_ref, w_ref, b_ref, o_ref):
    # logits = x @ W + b  (bf16 operands on the MXU, f32 accumulation)
    logits = jnp.dot(
        x_ref[...].astype(w_ref.dtype), w_ref[...],
        preferred_element_type=jnp.float32,
    ) + b_ref[...]
    m = jnp.max(logits, axis=-1, keepdims=True)
    shifted = logits - m
    lse = jnp.log(jnp.sum(jnp.exp(shifted), axis=-1, keepdims=True))
    o_ref[...] = (shifted - lse).astype(o_ref.dtype)


# -----------------------------------------------------------------------------
# Kernel 2 (tiled path, pass 1): single matmul pass per (row, vocab) tile.
# Streams raw f32 logits to HBM and accumulates a per-row running max / sum-exp
# in scratch; writes lse = m + log(l) at the last vocab tile.
# -----------------------------------------------------------------------------
def _logits_lse_kernel(x_ref, w_ref, b_ref, logits_ref, lse_ref, m_sc, l_sc):
    k = pl.program_id(1)

    @pl.when(k == 0)
    def _():
        m_sc[...] = jnp.full(m_sc.shape, -jnp.inf, m_sc.dtype)
        l_sc[...] = jnp.zeros(l_sc.shape, l_sc.dtype)

    logits = jnp.dot(
        x_ref[...].astype(w_ref.dtype), w_ref[...],
        preferred_element_type=jnp.float32,
    ) + b_ref[...]
    logits_ref[...] = logits

    m_prev = m_sc[...]
    m_new = jnp.maximum(m_prev, jnp.max(logits, axis=-1, keepdims=True))
    l_sc[...] = l_sc[...] * jnp.exp(m_prev - m_new) + jnp.sum(
        jnp.exp(logits - m_new), axis=-1, keepdims=True)
    m_sc[...] = m_new

    @pl.when(k == pl.num_programs(1) - 1)
    def _():
        lse_ref[...] = m_sc[...] + jnp.log(l_sc[...])


# -----------------------------------------------------------------------------
# Kernel 3 (tiled path, pass 2): cheap mem-bound finalize  out = logits - lse.
# -----------------------------------------------------------------------------
def _finalize_kernel(logits_ref, lse_ref, o_ref):
    o_ref[...] = (logits_ref[...] - lse_ref[...]).astype(o_ref.dtype)


def generator_forward(
    x,
    w,
    b,
    *,
    tm=None,
    tn=None,
    compute_dtype=jnp.bfloat16,
    out_dtype=jnp.bfloat16,   # pass jnp.float32 for full-precision log-probs
):
    """x: [B, S, D]; w: [D, V] (= nn.Linear weight transposed); b: [V].

    Returns log_softmax(x @ w + b, axis=-1) with shape [B, S, V] in out_dtype.
    """
    B, S, D = x.shape
    V = w.shape[1]
    M = B * S

    cdt = jnp.dtype(compute_dtype).itemsize
    xdt = jnp.dtype(x.dtype).itemsize
    odt = jnp.dtype(out_dtype).itemsize

    budget = _vmem_budget_bytes()

    # ---- row tile -----------------------------------------------------------
    m_full = _round_up(max(M, 1), 8)
    if tm is None:
        tm = 512 if budget >= (80 << 20) else 256
    tm = _round_up(max(8, min(int(tm), m_full)), 8)
    # ensure >= 2 row tiles so both TensorCores of a v7x chip get work (decode)
    if M >= 16 and tm >= m_full:
        tm = _round_up((M + 1) // 2, 8)

    # ---- VMEM models for the two paths --------------------------------------
    def fused_bytes(tm_):
        return (D * V * cdt + V * 4          # resident weight + bias (1-buffered)
                + 2 * tm_ * D * xdt          # x tiles (2-buffered)
                + 2 * tm_ * V * odt          # output tiles (2-buffered)
                + 2 * tm_ * V * 4)           # f32 logits temporaries

    def tiled_bytes(tm_, tn_):
        return (tm_ * D * xdt                # x tile (1-buffered)
                + 2 * D * tn_ * cdt          # weight tiles (2-buffered)
                + 2 * tn_ * 4                # bias tiles
                + 4 * tm_ * tn_ * 4          # f32 logits out tiles + temporaries
                + 2 * tm_ * 4                # lse output (resident)
                + 2 * tm_ * 4)               # m / l scratch

    force_tiled = tn is not None and int(tn) < V
    use_fused = False
    tm_f = tm
    if not force_tiled and D * V * cdt + V * 4 <= budget // 2:
        t = tm
        while t >= 8:
            if fused_bytes(t) <= budget:
                use_fused, tm_f = True, t
                break
            nt = _round_up(t // 2, 8)
            if nt >= t:
                break
            t = nt

    # =========================================================================
    # Fused path: full vocab per row tile, single pallas_call.
    # =========================================================================
    if use_fused:
        tm = tm_f
        M_pad = _round_up(M, tm)
        xp = x.reshape(M, D)
        if M_pad != M:
            xp = jnp.pad(xp, ((0, M_pad - M), (0, 0)))
        wp = w.astype(compute_dtype)
        bp = b.reshape(1, V).astype(jnp.float32)

        cost = pl.CostEstimate(
            flops=2 * M_pad * D * V,
            transcendentals=M_pad * V,
            bytes_accessed=(M_pad * D * xdt + D * V * cdt + V * 4
                            + M_pad * V * odt),
        )
        out = pl.pallas_call(
            _fused_kernel,
            out_shape=jax.ShapeDtypeStruct((M_pad, V), out_dtype),
            grid_spec=pltpu.PrefetchScalarGridSpec(
                num_scalar_prefetch=0,
                grid=(M_pad // tm,),
                in_specs=[
                    pl.BlockSpec((tm, D), lambda i: (i, 0)),
                    # weight / bias are grid-invariant -> single-buffer them
                    pl.BlockSpec((D, V), lambda i: (0, 0),
                                 pipeline_mode=pl.Buffered(1)),
                    pl.BlockSpec((1, V), lambda i: (0, 0),
                                 pipeline_mode=pl.Buffered(1)),
                ],
                out_specs=pl.BlockSpec((tm, V), lambda i: (i, 0)),
            ),
            compiler_params=pltpu.CompilerParams(
                dimension_semantics=("parallel",),
                vmem_limit_bytes=budget,
            ),
            cost_estimate=cost,
        )(xp, wp, bp)
        if M_pad != M:
            out = out[:M]
        return out.reshape(B, S, V)

    # =========================================================================
    # Tiled path: single matmul pass + LSE stats, then mem-bound finalize.
    # =========================================================================
    if tn is not None:
        tn = _round_up(max(128, int(tn)), 128)
    else:
        tn = min(4096, _round_up(V, 256))
        # keep the 2-buffered weight tile within ~1/3 of the budget (D-aware)
        while tn > 256 and (2 * D * tn * cdt > budget // 3
                            or tiled_bytes(tm, tn) > budget):
            tn -= 256
    while tiled_bytes(tm, tn) > budget and tm > 8:
        tm = max(8, _round_up(tm // 2, 8))

    M_pad = _round_up(M, tm)
    V_pad = _round_up(V, tn)
    nR = M_pad // tm
    nV = V_pad // tn

    xp = x.reshape(M, D)
    if M_pad != M:
        xp = jnp.pad(xp, ((0, M_pad - M), (0, 0)))
    wp = w.astype(compute_dtype)
    bp = b.reshape(1, V).astype(jnp.float32)
    if V_pad != V:
        # Padded vocab columns: zero weights + very negative bias -> exp()==0,
        # never the max -> numerically inert; sliced off at the end.
        wp = jnp.pad(wp, ((0, 0), (0, V_pad - V)))
        bp = jnp.pad(bp, ((0, 0), (0, V_pad - V)), constant_values=-1e30)

    matmul_cost = pl.CostEstimate(
        flops=2 * M_pad * D * V_pad,
        transcendentals=M_pad * V_pad,
        bytes_accessed=(nR * D * V_pad * cdt + M_pad * D * xdt + V_pad * 4
                        + M_pad * V_pad * 4 + M_pad * 4),
    )
    logits, lse = pl.pallas_call(
        _logits_lse_kernel,
        out_shape=(jax.ShapeDtypeStruct((M_pad, V_pad), jnp.float32),
                   jax.ShapeDtypeStruct((M_pad, 1), jnp.float32)),
        grid_spec=pltpu.PrefetchScalarGridSpec(
            num_scalar_prefetch=0,
            grid=(nR, nV),
            in_specs=[
                # x block only changes once per vocab sweep -> single-buffer
                pl.BlockSpec((tm, D), lambda i, k: (i, 0),
                             pipeline_mode=pl.Buffered(1)),
                pl.BlockSpec((D, tn), lambda i, k: (0, k)),
                pl.BlockSpec((1, tn), lambda i, k: (0, k)),
            ],
            out_specs=[
                pl.BlockSpec((tm, tn), lambda i, k: (i, k)),   # raw logits
                pl.BlockSpec((tm, 1), lambda i, k: (i, 0)),    # lse (resident)
            ],
            scratch_shapes=[
                pltpu.VMEM((tm, 1), jnp.float32),   # running max m
                pltpu.VMEM((tm, 1), jnp.float32),   # running sum-exp l
            ],
        ),
        compiler_params=pltpu.CompilerParams(
            dimension_semantics=("parallel", "arbitrary"),
            vmem_limit_bytes=budget,
        ),
        cost_estimate=matmul_cost,
    )(xp, wp, bp)

    fin_cost = pl.CostEstimate(
        flops=M_pad * V_pad,
        transcendentals=0,
        bytes_accessed=M_pad * V_pad * 4 + M_pad * 4 + M_pad * V_pad * odt,
    )
    out = pl.pallas_call(
        _finalize_kernel,
        out_shape=jax.ShapeDtypeStruct((M_pad, V_pad), out_dtype),
        grid_spec=pltpu.PrefetchScalarGridSpec(
            num_scalar_prefetch=0,
            grid=(nR, nV),
            in_specs=[
                pl.BlockSpec((tm, tn), lambda i, k: (i, k)),
                pl.BlockSpec((tm, 1), lambda i, k: (i, 0)),
            ],
            out_specs=pl.BlockSpec((tm, tn), lambda i, k: (i, k)),
        ),
        compiler_params=pltpu.CompilerParams(
            dimension_semantics=("parallel", "parallel"),
            vmem_limit_bytes=budget,
        ),
        cost_estimate=fin_cost,
    )(logits, lse)

    out = out[:M, :V]
    return out.reshape(B, S, V)


if __name__ == "__main__":
    # Small shapes consistent with Generator(d_model, vocab)
    B, S, D, V = 2, 8, 32, 256

    key = jax.random.PRNGKey(0)
    kx, kw, kb = jax.random.split(key, 3)

    # Deterministic init (mimics nn.Linear's U(-1/sqrt(D), 1/sqrt(D)))
    bound = 1.0 / jnp.sqrt(jnp.float32(D))
    w = jax.random.uniform(kw, (D, V), jnp.float32, -bound, bound)  # = proj.weight.T
    b = jax.random.uniform(kb, (V,), jnp.float32, -bound, bound)    # = proj.bias
    x = jax.random.normal(kx, (B, S, D), jnp.float32)

    # Reference with the same bf16-operand / f32-accumulate matmul as the kernel.
    logits_ref = jnp.dot(
        x.reshape(-1, D).astype(jnp.bfloat16), w.astype(jnp.bfloat16),
        preferred_element_type=jnp.float32,
    ) + b
    ref = jax.nn.log_softmax(logits_ref, axis=-1).reshape(B, S, V)

    # Fused path (auto) and vocab-tiled single-pass path, f32 output.
    out_fused = jax.block_until_ready(
        generator_forward(x, w, b, out_dtype=jnp.float32))
    out_tiled = jax.block_until_ready(
        generator_forward(x, w, b, tn=128, out_dtype=jnp.float32))
    # Default bf16 output (halved HBM writeback; ~3 decimal digits of precision).
    out_bf16 = jax.block_until_ready(generator_forward(x, w, b))

    assert out_fused.shape == (B, S, V)
    assert out_tiled.shape == (B, S, V)
    assert out_bf16.dtype == jnp.bfloat16
    assert jnp.allclose(out_fused, ref, atol=1e-3, rtol=1e-3)
    assert jnp.allclose(out_tiled, ref, atol=1e-3, rtol=1e-3)
    assert jnp.allclose(out_bf16.astype(jnp.float32), ref, atol=1e-1, rtol=1e-2)

    # Ragged shapes: V not a multiple of 128, M not a multiple of the row tile.
    B2, S2, D2, V2 = 2, 7, 32, 200
    kx2, kw2, kb2 = jax.random.split(jax.random.PRNGKey(1), 3)
    bound2 = 1.0 / jnp.sqrt(jnp.float32(D2))
    w2 = jax.random.uniform(kw2, (D2, V2), jnp.float32, -bound2, bound2)
    b2 = jax.random.uniform(kb2, (V2,), jnp.float32, -bound2, bound2)
    x2 = jax.random.normal(kx2, (B2, S2, D2), jnp.float32)
    logits_ref2 = jnp.dot(
        x2.reshape(-1, D2).astype(jnp.bfloat16), w2.astype(jnp.bfloat16),
        preferred_element_type=jnp.float32,
    ) + b2
    ref2 = jax.nn.log_softmax(logits_ref2, axis=-1).reshape(B2, S2, V2)

    out2_fused = jax.block_until_ready(
        generator_forward(x2, w2, b2, out_dtype=jnp.float32))
    out2_tiled = jax.block_until_ready(
        generator_forward(x2, w2, b2, tn=128, out_dtype=jnp.float32))
    assert jnp.allclose(out2_fused, ref2, atol=1e-3, rtol=1e-3)
    assert jnp.allclose(out2_tiled, ref2, atol=1e-3, rtol=1e-3)

    print("KERNEL_OK")
</pallas_src>

<mosaic_0001>
module attributes {stable_mosaic.version = 11 : i64} {
  func.func @_fused_kernel(%arg0: i32, %arg1: memref<8x32xf32, #tpu.memory_space<vmem>>, %arg2: memref<32x256xbf16, #tpu.memory_space<vmem>>, %arg3: memref<1x256xf32, #tpu.memory_space<vmem>>, %arg4: memref<8x256xf32, #tpu.memory_space<vmem>>) attributes {dimension_semantics = [#tpu.dimension_semantics<parallel>], iteration_bounds = array<i64: 2>, scalar_prefetch = 0 : i64, scratch_operands = 0 : i64, tpu.core_type = #tpu.core_type<tc>, window_params = [{transform_indices = @transform_0, window_bounds = array<i64: 8, 32>}, {pipeline_mode = #tpu.pipeline_mode<synchronous>, transform_indices = @transform_1, window_bounds = array<i64: 32, 256>}, {pipeline_mode = #tpu.pipeline_mode<synchronous>, transform_indices = @transform_2, window_bounds = array<i64: 1, 256>}, {transform_indices = @transform_3, window_bounds = array<i64: 8, 256>}]} {
    %c0 = arith.constant 0 : index
    %c0_0 = arith.constant 0 : index
    %0 = vector.load %arg1[%c0, %c0_0] : memref<8x32xf32, #tpu.memory_space<vmem>>, vector<8x32xf32>
    %1 = arith.truncf %0 : vector<8x32xf32> to vector<8x32xbf16>
    %c0_1 = arith.constant 0 : index
    %c0_2 = arith.constant 0 : index
    %2 = vector.load %arg2[%c0_1, %c0_2] : memref<32x256xbf16, #tpu.memory_space<vmem>>, vector<32x256xbf16>
    %cst = arith.constant dense<0.000000e+00> : vector<8x256xf32>
    %3 = tpu.matmul %1, %2, %cst {dimension_numbers = #tpu.dot_dimension_numbers<[1], [0], [0], [1], [0, 0, 1, 1], [], []>} : vector<8x32xbf16>, vector<32x256xbf16>, vector<8x256xf32> -> vector<8x256xf32>
    %c0_3 = arith.constant 0 : index
    %c0_4 = arith.constant 0 : index
    %4 = vector.load %arg3[%c0_3, %c0_4] : memref<1x256xf32, #tpu.memory_space<vmem>>, vector<1x256xf32>
    %5 = vector.broadcast %4 : vector<1x256xf32> to vector<8x256xf32>
    %6 = arith.addf %3, %5 : vector<8x256xf32>
    %cst_5 = arith.constant dense<0xFF800000> : vector<8xf32>
    %7 = vector.multi_reduction <maximumf>, %6, %cst_5 [1] : vector<8x256xf32> to vector<8xf32>
    %8 = vector.shape_cast %7 : vector<8xf32> to vector<8x1xf32>
    %9 = vector.broadcast %8 : vector<8x1xf32> to vector<8x256xf32>
    %10 = arith.subf %6, %9 : vector<8x256xf32>
    %11 = math.exp %10 : vector<8x256xf32>
    %cst_6 = arith.constant dense<0.000000e+00> : vector<8xf32>
    %12 = vector.multi_reduction <add>, %11, %cst_6 [1] : vector<8x256xf32> to vector<8xf32>
    %13 = vector.shape_cast %12 : vector<8xf32> to vector<8x1xf32>
    %14 = math.log %13 : vector<8x1xf32>
    %15 = vector.broadcast %14 : vector<8x1xf32> to vector<8x256xf32>
    %16 = arith.subf %10, %15 : vector<8x256xf32>
    %c0_7 = arith.constant 0 : index
    %c0_8 = arith.constant 0 : index
    %17 = vector.load %arg4[%c0_7, %c0_8] : memref<8x256xf32, #tpu.memory_space<vmem>>, vector<8x256xf32>
    tpu.vector_store %arg4[%c0_7, %c0_8], %16 {strides = array<i32>} : memref<8x256xf32, #tpu.memory_space<vmem>>, vector<8x256xf32>,
    return
  }
  func.func @transform_0(%arg0: i32) -> (i32, i32) {
    %c0_i32 = arith.constant 0 : i32
    %c0_i32_0 = arith.constant 0 : i32
    return %arg0, %c0_i32 : i32, i32
  }
  func.func @transform_1(%arg0: i32) -> (i32, i32) {
    %c0_i32 = arith.constant 0 : i32
    %c0_i32_0 = arith.constant 0 : i32
    %c0_i32_1 = arith.constant 0 : i32
    return %c0_i32, %c0_i32_0 : i32, i32
  }
  func.func @transform_2(%arg0: i32) -> (i32, i32) {
    %c0_i32 = arith.constant 0 : i32
    %c0_i32_0 = arith.constant 0 : i32
    %c0_i32_1 = arith.constant 0 : i32
    return %c0_i32, %c0_i32_0 : i32, i32
  }
  func.func @transform_3(%arg0: i32) -> (i32, i32) {
    %c0_i32 = arith.constant 0 : i32
    %c0_i32_0 = arith.constant 0 : i32
    return %arg0, %c0_i32 : i32, i32
  }
}

</mosaic_0001>

<bundles_post_ra>
// kernel: tpu_custom_call.1
= control target key start
LH: loop header
LB: loop body
LE: loop exit
PB: predicated region body
PF: predicated region fallthrough
CT: control target
= control target key end

     0   :  { %8 = vsyncpa [#allocation3], 0  ;;  %s805_s0 = inlined_call_operand.hbm [shape: f32[16,32], index: 0, kind: input, shape index: {}]   ;;  %s806_s1 = inlined_call_operand.hbm [shape: bf16[32,256], index: 1, kind: input, shape index: {}]   ;;  %s807_s2 = inlined_call_operand.vmem [shape: f32[1,256], index: 2, kind: input, shape index: {}]   ;;  %s808_s3 = inlined_call_operand.hbm [shape: f32[16,256], index: 3, kind: output, shape index: {}]  }
   0x1   :  { %10 = vsyncpa [#allocation3 + $0x1], 0 }
   0x2   :  { %11 = vsyncpa [#allocation6], 0 }
   0x3   :  { %12 = vsyncpa [#allocation4], 0 }
   0x4   :  { %14 = vsyncpa [#allocation4 + $0x1], 0  ;;  %s641_s12 = smov 0   ;;  %s643_s13 = smov 0  }
   0x5   :  { %s645_s14 = smov 0   ;;  %s647_s15 = smov 0  }
   0x6 LB: > { %s662_s16 = sadd.s32 4294967295, %s613_s15   ;;  %s398_s17 = sadd.s32 4294967294, %s613_s15   ;;  %s613_s15 = sphi %s647_s15, %s830_s15   ;;  %s609_s14 = sphi %s645_s14, %s829_s14   ;;  %s605_s13 = sphi %s643_s13, %s828_s13   ;;  %s601_s12 = sphi %s641_s12, %s827_s12  }
   0x7   : > { %p40_p0 = scmp.ne.s32.totalorder %s605_s13, %s601_s12  ;;  %p809_p1 = scmp.eq.s32.totalorder %s662_s16, 0 }
   0x8   : > { %p112_p3 = scmp.eq.s32.totalorder %s398_s17, 1  ;;  %p399_p5 = scmp.ge.s32.totalorder %s613_s15, 1 }
   0x9   : > { %p671_p4 = por %p809_p1, %p40_p0  ;;  %p119_p7 = scmp.lt.s32.totalorder %s613_s15, 3 }
   0xa   : > { %p676_p6 = por %p112_p3, %p40_p0  ;;  %s615_s21 = smov [#allocation5]  }
   0xb   : > { %s813_s18 = scalar_select %p671_p4, 1, 0 }
   0xc   : > { %s814_s19 = scalar_select %p676_p6, 1, 0 }
   0xd   : > { %p681_p8 = pnand %p399_p5, %p119_p7  ;;  %s131_s22 = sshll.u32 %s615_s21, 4  ;;  %s132_s22 = int_to_ptr.vmem [resolvable:$true] %s131_s22 }
   0xe   : > { %s695_s24 = sadd.s32 1, %s613_s15   ;;  %s27_s25 = sadd.s32 1, %s609_s14 }
   0xf   : > { %s815_s20 = scalar_select %p681_p8, 1, 0 }
  0x10   : > { %p427_p9 = pneg %p681_p8  ;;  %s24_s26 = ssub.s32 %s613_s15, %s695_s24 }
  0x11   : > { %s502_s27 = scalar_lea.vmem %s132_s22, 512  ;;  %p510_p5 = scmp.lt.s32.totalorder %s132_s22, %s132_s22 }
  0x12   : > { %p690_p11 = pnand %p427_p9, %p809_p1  ;;  %p503_p13 = scmp.ne.s32.totalorder %s132_s22, %s502_s27 }
  0x13   : > { %p511_p7 = scmp.lt.s32.totalorder %s502_s27, %s502_s27 }
  0x14   : > { %p493_p12 = pneg %p690_p11 }
  0x15   : > { %p512_p10 = por %p511_p7, %p510_p5 }
  0x16   : > { %p505_p0 = pnand %p503_p13, %p493_p12 }
  0x18   : > { %p506_p3 = pneg %p505_p0 }
  0x1a   : > { %p513_p2 = pnand %p512_p10, %p506_p3 }
  0x1c   : > { %516 = shalt.err (!%p513_p2)
}
  0x1d   : > { %s616_s28 = smov 128   ;;  %s617_s29 = smov 8  }
  0x1e   : > { %430 = dma.hbm_to_vmem [thread:$0]  (!%p690_p11), %s806_s1, 512, %s132_s22, [#allocation6], %s616_s28, %s616_s28, %s617_s29  }
  0x1f   : > { %p25_p9 = scmp.eq.s32.totalorder %s24_s26, 0  ;;  %p34_p12 = scmp.ne.s32.totalorder %s609_s14, %s605_s13 }
  0x20   : > { %p35_p10 = scmp.eq.s32.totalorder %s613_s15, 0  ;;  %p440_p2 = scmp.lt.s32.totalorder %s613_s15, 2 }
  0x21   : > { %s712_s5 = scalar_select %p25_p9, %s609_s14, %s27_s25  }
  0x22   : > { %p36_p13 = por %p35_p10, %p34_p12  ;;  %p817_p0 = scmp.eq.s32.totalorder %s662_s16, 1 }
  0x23   : > { %s148_s7 = sand.u32 1, %s609_s14   ;;  %s403_s8 = sshll.u32 %s613_s15, 7 }
  0x24   : > { %p716_p3 = por %p817_p0, %p34_p12  ;;  %s402_s9 = sshll.u32 %s148_s7, 3 }
  0x25   : > { %s725_s17 = scalar_lea.hbm %s805_s0, %s403_s8  ;;  %s152_s21 = scalar_lea.vmem [#allocation2], %s402_s9 }
  0x26   : > { %s818_s6 = scalar_select %p716_p3, 1, 0 }
  0x27   : > { %s159_s22 = sshll.u32 %s152_s21, 4  ;;  %p727_p11 = pnand %p440_p2, %p36_p13  ;;  %s160_s22 = int_to_ptr.vmem [resolvable:$true] %s159_s22 }
  0x28   : > { %s149_s25 = scalar_lea.sflag [#allocation3], %s148_s7  ;;  %s517_s26 = scalar_lea.hbm %s725_s17, 128 }
  0x29   : > { %p518_p5 = scmp.ne.s32.totalorder %s725_s17, %s517_s26  ;;  %p519_p7 = pneg %p727_p11 }
  0x2a   : > { %s522_s29 = scalar_lea.hbm %s805_s0, 256  ;;  %p523_p10 = scmp.lt.s32.totalorder %s725_s17, %s805_s0 }
  0x2b   : > { %p520_p9 = pnand %p519_p7, %p518_p5  ;;  %p524_p2 = scmp.lt.s32.totalorder %s522_s29, %s517_s26 }
  0x2d   : > { %p521_p12 = pneg %p520_p9  ;;  %p525_p13 = por %p524_p2, %p523_p10 }
  0x2f   : > { %p526_p0 = pnand %p525_p13, %p521_p12 }
  0x31   : > { %529 = shalt.err (!%p526_p0)
}
  0x32   : > { %s530_s8 = scalar_lea.vmem %s160_s22, 128  ;;  %s618_s7 = smov [#allocation2]  }
  0x33   : > { %p531_p1 = scmp.ne.s32.totalorder %s160_s22, %s530_s8  ;;  %s535_s9 = sshll.u32 %s618_s7, 4  ;;  %s536_s9 = int_to_ptr.vmem [resolvable:$false] %s535_s9 }
  0x34   : > { %s537_s10 = scalar_lea.vmem %s536_s9, 256  ;;  %p538_p5 = scmp.lt.s32.totalorder %s160_s22, %s536_s9 }
  0x35   : > { %p533_p6 = pnand %p531_p1, %p519_p7  ;;  %p539_p9 = scmp.lt.s32.totalorder %s537_s10, %s530_s8 }
  0x37   : > { %p534_p3 = pneg %p533_p6  ;;  %p540_p4 = por %p539_p9, %p538_p5 }
  0x39   : > { %p541_p8 = pnand %p540_p4, %p534_p3 }
  0x3b   : > { %544 = shalt.err (!%p541_p8)
}
  0x3c   : > { %434 = dma.hbm_to_vmem [thread:$0]  (!%p727_p11), %s725_s17, 128, %s160_s22, %s149_s25  }
  0x3d   : > { %p820_p12 = scmp.ne.s32.totalorder %s815_s20, 0 }
  0x3e   : > { %s748_s11 = sand.u32 (!%p820_p12), 1, %s605_s13   ;;  %p821_p1 = scmp.ne.s32.totalorder (!%p820_p12), %s813_s18, 0 }
  0x3f   : > { %168 = sbr.rel (%p820_p12) target bundleno = 608 (0x260), region = 32  ;;  %s405_s21 = sshll.u32 (!%p820_p12), %s748_s11, 3 }
  0x40   : > { %s171_s26 = scalar_lea.sflag (!%p820_p12), [#allocation3], %s748_s11  ;;  %s174_s27 = scalar_lea.vmem (!%p820_p12), [#allocation2], %s405_s21 }
  0x44   : > { %588 = dma.done.wait (%p821_p1), %s171_s26, 128  }
  0x45   : > { %590 = vsyncadd (%p821_p1), %s171_s26, 4294967168  ;;  %p822_p4 = scmp.eq.s32.totalorder %s662_s16, 0 }
  0x47   : > { %592 = dma.done.wait (%p822_p4), [#allocation6], 512   ;;  %p823_p6 = pmov %p822_p4 }
  0x48   : > { %v619_v0 = vmov 0   ;;  %v479_v1 = vld [vmem:[#allocation5 + $0x14] ss:$8 sps:$4 sm:$0xff]   ;;  %v481_v2 = vld [vmem:[#allocation5 + $0x10] ss:$8 sps:$4 sm:$0xff]   ;;  %vm240_vm0 = vcmask 261120   ;;  %v210_v7 = vlaneseq }
  0x49   : > { %594 = vsyncadd (%p823_p6), [#allocation6], 4294966784  ;;  %276 = vmatprep.mubr.bf16.mxu0 %v619_v0  ;;  %256 = vmatprep.subr.bf16.mxu0 %v479_v1  ;;  %v482_v3 = vld [vmem:[#allocation5 + $0x4] ss:$8 sps:$4 sm:$0xff]   ;;  %v484_v4 = vld [vmem:[#allocation5] ss:$8 sps:$4 sm:$0xff]  }
  0x4a   : > { %257 = vmatpush1.bf16.msra.mxu0 %v481_v2  ;;  %v202_v5 = vld [vmem:[%s174_s27] sm:$0xff]  ;;  %v211_v8 = vshrl.u32 %v210_v7, 7  ;;  %s407_s17 = sshll.u32 %s748_s11, 4  ;;  %s418_s22 = sshll.u32 %s662_s16, 8 }
  0x4b   : > { %258 = vmatprep.subr.bf16.mxu0 %v482_v3  ;;  %v203_v6 = vpack.c.bf16 %v202_v5, %v202_v5  ;;  %v208_v11 = vld [vmem:[%s807_s2] sm:$0x3]  ;;  %s200_s23 = scalar_lea.vmem [#allocation7], %s407_s17  ;;  %s768_s30 = scalar_lea.hbm %s808_s3, %s418_s22 }
  0x4c   : > { %v212_v9 = vsub.s32 0, %v211_v8  ;;  %v216_v10 = vsub.s32 1, %v211_v8  ;;  %s318_s25 = sshll.u32 %s200_s23, 4  ;;  %s304_s4 = scalar_lea.sflag [#allocation4], %s748_s11  ;;  %s319_s25 = int_to_ptr.vmem [resolvable:$true] %s318_s25 }
  0x4d   : > { %s545_s8 = scalar_lea.vmem %s319_s25, 256  ;;  %p824_p3 = scmp.ne.s32.totalorder %s818_s6, 0 }
  0x4e   : > { %259 = vmatpush1.bf16.msra.mxu0 %v484_v4  ;;  %v213_v12 = vrot.slane %v208_v11, %v212_v9  ;;  %v217_v13 = vrot.slane %v208_v11, %v216_v10  ;;  %p546_p8 = scmp.ne.s32.totalorder %s319_s25, %s545_s8  ;;  %s620_s16 = smov [#allocation7]  }
  0x4f   : > { %s549_s7 = sshll.u32 %s620_s16, 4  ;;  %s550_s7 = int_to_ptr.vmem [resolvable:$false] %s549_s7 }
  0x50   : > { %p547_p11 = pnand %p546_p8, %p824_p3  ;;  %s551_s9 = scalar_lea.vmem %s550_s7, 512 }
  0x51   : > { %412 = vmatmul.mubr.msk.bf16.vlgmr.msra.gmra.mxu0 %vm240_vm0, %v203_v6  ;;  %p552_p10 = scmp.lt.s32.totalorder %s319_s25, %s550_s7  ;;  %p553_p2 = scmp.lt.s32.totalorder %s551_s9, %s545_s8 }
  0x52   : > { %p548_p7 = pneg %p547_p11 }
  0x53   : > { %p554_p13 = por %p553_p2, %p552_p10 }
  0x55   : > { %p555_p0 = pnand %p554_p13, %p548_p7 }
 0x111   : > { %v278_v14 = vpop.f32.mrf.mxu0 }
 0x112   : > { %v279_v16 = vadd.f32 %v278_v14, %v213_v12 }
 0x113   : > { %v280_v15 = vpop.f32.mrf.mxu0 }
 0x114   : > { %v281_v17 = vadd.f32 %v280_v15, %v217_v13 }
 0x115   : > { %v282_v18 = vpop.f32.mrf.mxu0 }
 0x116   : > { %v285_v19 = vmax.f32 %v279_v16, %v281_v17 }
 0x117   : > { %v283_v20 = vpop.f32.mrf.mxu0 }
 0x118   : > { %286 = vmax.xlane.f32.xlu0 %v285_v19 }
 0x1a1   : > { %v287_v21 = vpop.xlane.xlu0 %286 }
 0x1a2   : > { %v288_v22 = vsub.f32 %v279_v16, %v287_v21  ;;  %v289_v23 = vsub.f32 %v281_v17, %v287_v21 }
 0x1a4   : > { %v290_v24 = vmul.f32 1.442695, %v288_v22  ;;  %v292_v25 = vmul.f32 1.442695, %v289_v23 }
 0x1a6   : > { %485 = vpow2.f32 %v290_v24 }
 0x1a7   : > { %487 = vpow2.f32 %v292_v25 }
 0x1b3   : > { %v486_v26 = vpop.eup %485 }
 0x1b4   : > { %v488_v27 = vpop.eup %487 }
 0x1b5   : > { %v294_v28 = vadd.f32 %v488_v27, %v486_v26 }
 0x1b7   : > { %295 = vadd.xlane.f32.xlu0 %v294_v28 }
 0x240   : > { %v296_v29 = vpop.xlane.xlu0 %295 }
 0x241   : > { %489 = vlog2.f32 %v296_v29 }
 0x24e   : > { %v490_v30 = vpop.eup %489 }
 0x24f   : > { %v298_v31 = vmul.f32 0.6931472, %v490_v30 }
 0x251   : > { %v299_v32 = vsub.f32 %v288_v22, %v298_v31  ;;  %v300_v33 = vsub.f32 %v289_v23, %v298_v31 }
 0x253   : > { %301 = vst [vmem:[%s200_s23] sm:$0xff] %v299_v32  ;;  %302 = vst [vmem:[%s200_s23 + $0x8] sm:$0xff] %v300_v33 }
 0x254   : > { %558 = shalt.err (!%p555_p0)
}
 0x255   : > { %s559_s10 = scalar_lea.hbm %s768_s30, 256  ;;  %s563_s26 = scalar_lea.hbm %s808_s3, 512 }
 0x256   : > { %p560_p5 = scmp.ne.s32.totalorder %s768_s30, %s559_s10  ;;  %p564_p1 = scmp.lt.s32.totalorder %s768_s30, %s808_s3 }
 0x257   : > { %p565_p4 = scmp.lt.s32.totalorder %s563_s26, %s559_s10 }
 0x258   : > { %p561_p9 = pnand %p560_p5, %p824_p3 }
 0x259   : > { %p566_p6 = por %p565_p4, %p564_p1 }
 0x25a   : > { %p562_p12 = pneg %p561_p9 }
 0x25c   : > { %p567_p8 = pnand %p566_p6, %p562_p12 }
 0x25e   : > { %570 = shalt.err (!%p567_p8)
}
 0x25f   : > { %425 = dma.vmem_to_hbm [thread:$0]  (%p824_p3), %s319_s25, 256, %s768_s30, %s304_s4  }
 0x260 PF: > { %s330_s20 = sand.u32 1, %s601_s12   ;;  %p825_p11 = scmp.ne.s32.totalorder %s814_s19, 0 }
 0x261   : > { %p826_p7 = scmp.ge.s32.totalorder %s613_s15, 2  ;;  %s331_s17 = scalar_lea.sflag [#allocation4], %s330_s20 }
 0x263   : > { %p436_p10 = pnand %p826_p7, %p825_p11 }
 0x265   : > { %p437_p2 = pneg %p436_p10 }
 0x267   : > { %596 = dma.done.wait (%p437_p2), %s331_s17, 256  }
 0x268   : > { %598 = vsyncadd (%p437_p2), %s331_s17, 4294967040  ;;  %p17_p13 = scmp.ge.s32.totalorder %s695_s24, 4   ;;  %s827_s12 = smov %s605_s13 }
 0x269   : > { %s828_s13 = smov %s609_s14  ;;  %s829_s14 = smov %s712_s5 }
 0x26a   : > { %s830_s15 = smov %s695_s24  ;;  %19 = sbr.rel (!%p17_p13) target bundleno = 6 (0x6), region = 81 }
 0x26f   :  { %336 = vsyncpa [#allocation3], 1 }
 0x270   :  { %338 = vsyncpa [#allocation3 + $0x1], 1 }
 0x271   :  { %339 = vsyncpa [#allocation6], 1 }
 0x272   :  { %340 = vsyncpa [#allocation4], 1 }
 0x273   :  { %342 = vsyncpa [#allocation4 + $0x1], 1 }

</bundles_post_ra>
